<compile_context>
chip_gen: v5e
topology: v5e:2x2
jax: 0.10.0
libtpu: 0.0.40
codegen_flags: <defaults>
</compile_context>

<pallas_src>
import functools

import jax
import jax.numpy as jnp
import numpy as np
from jax import lax
from jax.experimental import pallas as pl
from jax.experimental.pallas import tpu as pltpu

_ROW = 16      # row alignment (bf16 vreg sublane packing is (16, 128))
_LANE = 128


def _round_up(x: int, m: int) -> int:
    return (x + m - 1) // m * m


# --------------------------------- kernels ----------------------------------


def _mlp_resident_kernel(*refs, n_hidden: int, residual_start: bool):
    """All weights VMEM-resident.

    refs (n_hidden > 0): x(tm,din_p) bf16, w1(din_p,W_p) bf16,
                         wh(Lh,W_p,W_p) bf16, w2(W_p,dout_p) bf16, o(tm,dout_p) f32
    refs (n_hidden == 0): same without wh.
    """
    if n_hidden > 0:
        x_ref, w1_ref, wh_ref, w2_ref, o_ref = refs
    else:
        x_ref, w1_ref, w2_ref, o_ref = refs
        wh_ref = None

    x = x_ref[...]                                             # bf16
    a = jnp.dot(x, w1_ref[...], preferred_element_type=jnp.float32)
    if residual_start:
        a = a + x.astype(jnp.float32)

    if n_hidden > 0:
        if n_hidden <= 8:                                      # shallow: unroll
            for l in range(n_hidden):
                r = jnp.maximum(a, 0.0).astype(jnp.bfloat16)
                a = a + jnp.dot(r, wh_ref[l], preferred_element_type=jnp.float32)
        else:                                                  # deep: fori_loop
            def body(l, acc):
                r = jnp.maximum(acc, 0.0).astype(jnp.bfloat16)
                return acc + jnp.dot(r, wh_ref[l],
                                     preferred_element_type=jnp.float32)
            a = lax.fori_loop(0, n_hidden, body, a)

    r = jnp.maximum(a, 0.0).astype(jnp.bfloat16)
    o_ref[...] = jnp.dot(r, w2_ref[...],
                         preferred_element_type=jnp.float32).astype(o_ref.dtype)


def _mlp_streamed_kernel(x_ref, w1_ref, wh_hbm, w2_ref, o_ref,
                         wh_buf, sem, act_ref, *, n_hidden: int,
                         residual_start: bool):
    """Hidden weights streamed from HBM, 2-deep manual double buffer.

    wh_hbm : (Lh, W_p, W_p) bf16 raw HBM ref (memory_space=pl.ANY)
    wh_buf : (2, W_p, W_p)  bf16 VMEM scratch
    sem    : DMA semaphores (2,)
    act_ref: (tm, W_p) f32 VMEM scratch (one store + one load per layer)
    """
    x = x_ref[...]
    a = jnp.dot(x, w1_ref[...], preferred_element_type=jnp.float32)
    if residual_start:
        a = a + x.astype(jnp.float32)
    act_ref[...] = a

    # prime layer 0
    pltpu.make_async_copy(wh_hbm.at[0], wh_buf.at[0], sem.at[0]).start()

    @pl.loop(0, n_hidden)
    def _(l):
        slot = l & 1
        pltpu.make_async_copy(wh_hbm.at[l], wh_buf.at[slot], sem.at[slot]).wait()

        @pl.when(l + 1 < n_hidden)
        def _():
            pltpu.make_async_copy(wh_hbm.at[l + 1], wh_buf.at[1 - slot],
                                  sem.at[1 - slot]).start()

        acc = act_ref[...]
        r = jnp.maximum(acc, 0.0).astype(jnp.bfloat16)
        act_ref[...] = acc + jnp.dot(r, wh_buf[slot],
                                     preferred_element_type=jnp.float32)

    acc = act_ref[...]
    r = jnp.maximum(acc, 0.0).astype(jnp.bfloat16)
    o_ref[...] = jnp.dot(r, w2_ref[...],
                         preferred_element_type=jnp.float32).astype(o_ref.dtype)


# --------------------------------- wrapper ----------------------------------


def mlp_forward_pallas(x2d, w1_p, wh_p, w2_p, *, dim_out, n_hidden,
                       residual_start, tm_max=512, force_stream=False):
    """x2d: (M, dim_in). w*_p: lane-dense (128-multiple) bf16 weights.
    wh_p may be None when n_hidden == 0."""
    M, dim_in = x2d.shape
    din_p, W_p = w1_p.shape
    dout_p = w2_p.shape[1]

    # ---- row tiling: big tiles, but keep >=2 grid steps for v7x megacore ----
    m_al = _round_up(max(M, 1), _ROW)
    tm = min(tm_max, m_al)
    if m_al >= 2 * _ROW:
        tm = min(tm, _round_up((m_al + 1) // 2, _ROW))
    m_pad = _round_up(m_al, tm)
    grid = (m_pad // tm,)

    # ---- input: ship bf16; skip the zero-pad copy when already aligned ------
    x_bf = x2d.astype(jnp.bfloat16)
    if m_pad == M and din_p == dim_in:
        x_p = x_bf
    else:
        x_p = jnp.zeros((m_pad, din_p), jnp.bfloat16).at[:M, :dim_in].set(x_bf)

    # ---- VMEM planning (per-chip capacity, 15% headroom for Mosaic) ---------
    try:
        vmem_cap = int(pltpu.get_tpu_info().vmem_capacity_bytes)
    except Exception:
        vmem_cap = 64 * 1024 * 1024                    # conservative (v7x) fallback
    vmem_budget = int(vmem_cap * 0.85)

    io_bytes = 2 * (tm * din_p * 2 + tm * dout_p * 4)  # x/out tiles, double-buffered
    w_small = (w1_p.size + w2_p.size) * 2              # bf16, single-buffered
    wh_bytes = (wh_p.size * 2) if wh_p is not None else 0

    resident_est = io_bytes + w_small + wh_bytes
    stream = n_hidden > 0 and (force_stream or resident_est > vmem_budget)
    if stream:
        vmem_est = (io_bytes + w_small
                    + 2 * 2 * W_p * W_p                # 2-slot bf16 layer buffer
                    + tm * W_p * 4)                    # f32 activation scratch
    else:
        vmem_est = resident_est
    vmem_limit = int(min(max(vmem_est * 3 // 2, 32 * 1024 * 1024), vmem_budget))

    # ---- cost estimate -------------------------------------------------------
    flops = 2 * m_pad * (din_p * W_p + n_hidden * W_p * W_p + W_p * dout_p)
    wh_reads = wh_bytes * (grid[0] if stream else 1)
    cost = pl.CostEstimate(flops=flops, transcendentals=0,
                           bytes_accessed=x_p.size * 2 + w_small + wh_reads
                                          + m_pad * dout_p * 4)

    # ---- specs ---------------------------------------------------------------
    w_mode = pl.Buffered(1)    # constant block index -> single VMEM buffer
    in_specs = [pl.BlockSpec((tm, din_p), lambda i: (i, 0)),
                pl.BlockSpec((din_p, W_p), lambda i: (0, 0), pipeline_mode=w_mode)]
    args = [x_p, w1_p]
    if n_hidden > 0:
        if stream:
            in_specs.append(pl.BlockSpec(memory_space=pl.ANY))   # raw HBM ref
        else:
            in_specs.append(pl.BlockSpec(wh_p.shape, lambda i: (0, 0, 0),
                                         pipeline_mode=w_mode))
        args.append(wh_p)
    in_specs.append(pl.BlockSpec((W_p, dout_p), lambda i: (0, 0),
                                 pipeline_mode=w_mode))
    args.append(w2_p)

    if stream:
        kernel = functools.partial(_mlp_streamed_kernel, n_hidden=n_hidden,
                                   residual_start=residual_start)
        scratch = [pltpu.VMEM((2, W_p, W_p), jnp.bfloat16),
                   pltpu.SemaphoreType.DMA((2,)),
                   pltpu.VMEM((tm, W_p), jnp.float32)]
    else:
        kernel = functools.partial(_mlp_resident_kernel, n_hidden=n_hidden,
                                   residual_start=residual_start)
        scratch = []

    out_p = pl.pallas_call(
        kernel,
        out_shape=jax.ShapeDtypeStruct((m_pad, dout_p), jnp.float32),
        grid_spec=pltpu.PrefetchScalarGridSpec(
            num_scalar_prefetch=0,
            grid=grid,
            in_specs=in_specs,
            out_specs=pl.BlockSpec((tm, dout_p), lambda i: (i, 0)),
            scratch_shapes=scratch,
        ),
        compiler_params=pltpu.CompilerParams(
            dimension_semantics=("parallel",),
            vmem_limit_bytes=vmem_limit),
        cost_estimate=cost,
    )(*args)

    if m_pad == M and dout_p == dim_out:
        return out_p
    return out_p[:M, :dim_out]


# --------------------------------- module -----------------------------------


class MLPPallas:
    """Pallas port of models/Layers.py::MLP (bias=False path)."""

    def __init__(self, dim_in, dim_out, width, nb_layers, skip=1, bias=False, *, key):
        assert not bias, "reference module is used with bias=False"
        assert nb_layers >= 2
        self.dim_in, self.dim_out, self.width = dim_in, dim_out, width
        self.nb_layers = nb_layers
        self.skip = skip                      # unused in forward (matches PyTorch)
        self.residual_start = dim_in == width
        self.residual_end = dim_out == width
        self.n_hidden = nb_layers - 2

        keys = jax.random.split(key, nb_layers)

        def init(k, fan_in, fan_out):
            # PyTorch-Linear-like uniform(-1/sqrt(fan_in), 1/sqrt(fan_in)),
            # stored as (in, out) so y = x @ w == x @ W.T for nn.Linear.
            # Rounded through bf16 so kernel (bf16) and f32 reference use
            # numerically identical parameter values.
            bound = 1.0 / float(np.sqrt(fan_in))
            w = jax.random.uniform(k, (fan_in, fan_out), jnp.float32, -bound, bound)
            return w.astype(jnp.bfloat16).astype(jnp.float32)

        self.w1 = init(keys[0], dim_in, width)
        self.hidden = [init(keys[1 + i], width, width) for i in range(self.n_hidden)]
        self.w2 = init(keys[-1], width, dim_out)

        # kernel weights: zero-pad features to 128 multiples, cast to bf16,
        # fold residual_end's *2 into w2 (exact in bf16).
        din_p = _round_up(dim_in, _LANE)
        W_p = _round_up(width, _LANE)
        dout_p = _round_up(dim_out, _LANE)

        def pad2(w, r, c):
            return jnp.zeros((r, c), jnp.float32).at[:w.shape[0], :w.shape[1]].set(w)

        self.w1_p = pad2(self.w1, din_p, W_p).astype(jnp.bfloat16)
        if self.n_hidden > 0:
            wh = jnp.zeros((self.n_hidden, W_p, W_p), jnp.float32)
            for l, w in enumerate(self.hidden):
                wh = wh.at[l, :width, :width].set(w)
            self.wh_p = wh.astype(jnp.bfloat16)
        else:
            self.wh_p = None                  # no dummy slab when no hidden layers
        w2_eff = self.w2 * (2.0 if self.residual_end else 1.0)
        self.w2_p = pad2(w2_eff, W_p, dout_p).astype(jnp.bfloat16)

    def __call__(self, x, *, force_stream=False):
        lead = x.shape[:-1]
        x2 = x.reshape((-1, self.dim_in))
        out = mlp_forward_pallas(x2, self.w1_p, self.wh_p, self.w2_p,
                                 dim_out=self.dim_out, n_hidden=self.n_hidden,
                                 residual_start=self.residual_start,
                                 force_stream=force_stream)
        return out.reshape(lead + (self.dim_out,))

    def reference(self, x):
        """Pure-JAX f32 reference mirroring the PyTorch forward."""
        x2 = x.reshape((-1, self.dim_in)).astype(jnp.float32)
        out = x2 @ self.w1
        if self.residual_start:
            out = out + x2
        for w in self.hidden:
            out = out + jnp.maximum(out, 0.0) @ w
        out = jnp.maximum(out, 0.0) @ self.w2
        if self.residual_end:
            out = out + out
        return out.reshape(x.shape[:-1] + (self.dim_out,))


if __name__ == "__main__":
    key = jax.random.PRNGKey(0)
    k1, k2, k3, kx1, kx2, kx3 = jax.random.split(key, 6)

    def check(mlp, x, force_stream=False, tol=5e-2):
        y = jax.block_until_ready(mlp(x, force_stream=force_stream))
        y_ref = jax.block_until_ready(mlp.reference(x))
        np.testing.assert_allclose(np.asarray(y), np.asarray(y_ref),
                                   rtol=tol, atol=tol)

    # 1) dim_in == width == dim_out: both residual paths, resident weights.
    mlp_a = MLPPallas(32, 32, 32, nb_layers=4, skip=1, bias=False, key=k1)
    x_a = jax.random.normal(kx1, (8, 32), dtype=jnp.float32)
    check(mlp_a, x_a)

    # 2) same model, streamed-weight fallback path forced (v7x low-VMEM path).
    check(mlp_a, x_a, force_stream=True)

    # 3) deeper stack (fori_loop path), padded feature dims, 3-D input,
    #    multi-step row grid (M=40 -> 2 row tiles).
    mlp_b = MLPPallas(24, 48, 160, nb_layers=12, skip=1, bias=False, key=k2)
    x_b = jax.random.normal(kx2, (5, 8, 24), dtype=jnp.float32)
    check(mlp_b, x_b, tol=1e-1)

    # 4) nb_layers == 2: no hidden stack at all (no dummy wh slab passed).
    mlp_c = MLPPallas(32, 32, 64, nb_layers=2, skip=1, bias=False, key=k3)
    x_c = jax.random.normal(kx3, (8, 32), dtype=jnp.float32)
    check(mlp_c, x_c)

    print("KERNEL_OK")
</pallas_src>

<mosaic_0001>
module attributes {stable_mosaic.version = 11 : i64} {
  func.func @_mlp_resident_kernel(%arg0: i32, %arg1: memref<16x128xbf16, #tpu.memory_space<vmem>>, %arg2: memref<128x128xbf16, #tpu.memory_space<vmem>>, %arg3: memref<2x128x128xbf16, #tpu.memory_space<vmem>>, %arg4: memref<128x128xbf16, #tpu.memory_space<vmem>>, %arg5: memref<16x128xf32, #tpu.memory_space<vmem>>) attributes {dimension_semantics = [#tpu.dimension_semantics<parallel>], iteration_bounds = array<i64: 1>, scalar_prefetch = 0 : i64, scratch_operands = 0 : i64, tpu.core_type = #tpu.core_type<tc>, window_params = [{transform_indices = @transform_0, window_bounds = array<i64: 16, 128>}, {pipeline_mode = #tpu.pipeline_mode<synchronous>, transform_indices = @transform_1, window_bounds = array<i64: 128, 128>}, {pipeline_mode = #tpu.pipeline_mode<synchronous>, transform_indices = @transform_2, window_bounds = array<i64: 2, 128, 128>}, {pipeline_mode = #tpu.pipeline_mode<synchronous>, transform_indices = @transform_3, window_bounds = array<i64: 128, 128>}, {transform_indices = @transform_4, window_bounds = array<i64: 16, 128>}]} {
    %c0 = arith.constant 0 : index
    %c0_0 = arith.constant 0 : index
    %0 = vector.load %arg1[%c0, %c0_0] : memref<16x128xbf16, #tpu.memory_space<vmem>>, vector<16x128xbf16>
    %c0_1 = arith.constant 0 : index
    %c0_2 = arith.constant 0 : index
    %1 = vector.load %arg2[%c0_1, %c0_2] : memref<128x128xbf16, #tpu.memory_space<vmem>>, vector<128x128xbf16>
    %cst = arith.constant dense<0.000000e+00> : vector<16x128xf32>
    %2 = tpu.matmul %0, %1, %cst {dimension_numbers = #tpu.dot_dimension_numbers<[1], [0], [0], [1], [0, 0, 1, 1], [], []>} : vector<16x128xbf16>, vector<128x128xbf16>, vector<16x128xf32> -> vector<16x128xf32>
    %3 = arith.extf %0 : vector<16x128xbf16> to vector<16x128xf32>
    %4 = arith.addf %2, %3 : vector<16x128xf32>
    %cst_3 = arith.constant 0.000000e+00 : f32
    %5 = vector.broadcast %cst_3 : f32 to vector<16x128xf32>
    %6 = arith.maximumf %4, %5 : vector<16x128xf32>
    %7 = arith.truncf %6 : vector<16x128xf32> to vector<16x128xbf16>
    %c0_4 = arith.constant 0 : index
    %c0_5 = arith.constant 0 : index
    %c0_6 = arith.constant 0 : index
    %8 = vector.load %arg3[%c0_4, %c0_5, %c0_6] : memref<2x128x128xbf16, #tpu.memory_space<vmem>>, vector<1x128x128xbf16>
    %9 = vector.shape_cast %8 : vector<1x128x128xbf16> to vector<128x128xbf16>
    %cst_7 = arith.constant dense<0.000000e+00> : vector<16x128xf32>
    %10 = tpu.matmul %7, %9, %cst_7 {dimension_numbers = #tpu.dot_dimension_numbers<[1], [0], [0], [1], [0, 0, 1, 1], [], []>} : vector<16x128xbf16>, vector<128x128xbf16>, vector<16x128xf32> -> vector<16x128xf32>
    %11 = arith.addf %4, %10 : vector<16x128xf32>
    %cst_8 = arith.constant 0.000000e+00 : f32
    %12 = vector.broadcast %cst_8 : f32 to vector<16x128xf32>
    %13 = arith.maximumf %11, %12 : vector<16x128xf32>
    %14 = arith.truncf %13 : vector<16x128xf32> to vector<16x128xbf16>
    %c1 = arith.constant 1 : index
    %c0_9 = arith.constant 0 : index
    %c0_10 = arith.constant 0 : index
    %15 = vector.load %arg3[%c1, %c0_9, %c0_10] : memref<2x128x128xbf16, #tpu.memory_space<vmem>>, vector<1x128x128xbf16>
    %16 = vector.shape_cast %15 : vector<1x128x128xbf16> to vector<128x128xbf16>
    %cst_11 = arith.constant dense<0.000000e+00> : vector<16x128xf32>
    %17 = tpu.matmul %14, %16, %cst_11 {dimension_numbers = #tpu.dot_dimension_numbers<[1], [0], [0], [1], [0, 0, 1, 1], [], []>} : vector<16x128xbf16>, vector<128x128xbf16>, vector<16x128xf32> -> vector<16x128xf32>
    %18 = arith.addf %11, %17 : vector<16x128xf32>
    %cst_12 = arith.constant 0.000000e+00 : f32
    %19 = vector.broadcast %cst_12 : f32 to vector<16x128xf32>
    %20 = arith.maximumf %18, %19 : vector<16x128xf32>
    %21 = arith.truncf %20 : vector<16x128xf32> to vector<16x128xbf16>
    %c0_13 = arith.constant 0 : index
    %c0_14 = arith.constant 0 : index
    %22 = vector.load %arg4[%c0_13, %c0_14] : memref<128x128xbf16, #tpu.memory_space<vmem>>, vector<128x128xbf16>
    %cst_15 = arith.constant dense<0.000000e+00> : vector<16x128xf32>
    %23 = tpu.matmul %21, %22, %cst_15 {dimension_numbers = #tpu.dot_dimension_numbers<[1], [0], [0], [1], [0, 0, 1, 1], [], []>} : vector<16x128xbf16>, vector<128x128xbf16>, vector<16x128xf32> -> vector<16x128xf32>
    %c0_16 = arith.constant 0 : index
    %c0_17 = arith.constant 0 : index
    %24 = vector.load %arg5[%c0_16, %c0_17] : memref<16x128xf32, #tpu.memory_space<vmem>>, vector<16x128xf32>
    tpu.vector_store %arg5[%c0_16, %c0_17], %23 {strides = array<i32>} : memref<16x128xf32, #tpu.memory_space<vmem>>, vector<16x128xf32>,
    return
  }
  func.func @transform_0(%arg0: i32) -> (i32, i32) {
    %c0_i32 = arith.constant 0 : i32
    %c0_i32_0 = arith.constant 0 : i32
    return %arg0, %c0_i32 : i32, i32
  }
  func.func @transform_1(%arg0: i32) -> (i32, i32) {
    %c0_i32 = arith.constant 0 : i32
    %c0_i32_0 = arith.constant 0 : i32
    %c0_i32_1 = arith.constant 0 : i32
    return %c0_i32, %c0_i32_0 : i32, i32
  }
  func.func @transform_2(%arg0: i32) -> (i32, i32, i32) {
    %c0_i32 = arith.constant 0 : i32
    %c0_i32_0 = arith.constant 0 : i32
    %c0_i32_1 = arith.constant 0 : i32
    %c0_i32_2 = arith.constant 0 : i32
    return %c0_i32, %c0_i32_0, %c0_i32_1 : i32, i32, i32
  }
  func.func @transform_3(%arg0: i32) -> (i32, i32) {
    %c0_i32 = arith.constant 0 : i32
    %c0_i32_0 = arith.constant 0 : i32
    %c0_i32_1 = arith.constant 0 : i32
    return %c0_i32, %c0_i32_0 : i32, i32
  }
  func.func @transform_4(%arg0: i32) -> (i32, i32) {
    %c0_i32 = arith.constant 0 : i32
    %c0_i32_0 = arith.constant 0 : i32
    return %arg0, %c0_i32 : i32, i32
  }
}

</mosaic_0001>

<bundles_post_ra>
// kernel: tpu_custom_call.1
= control target key start
LH: loop header
LB: loop body
LE: loop exit
PB: predicated region body
PF: predicated region fallthrough
CT: control target
= control target key end

     0   :  { %9 = vsyncpa [#allocation3], 0  ;;  %s791_s0 = inlined_call_operand.hbm [shape: bf16[16,128], index: 0, kind: input, shape index: {}]   ;;  %s792_s1 = inlined_call_operand.hbm [shape: bf16[128,128], index: 1, kind: input, shape index: {}]   ;;  %s793_s2 = inlined_call_operand.hbm [shape: bf16[2,128,128], index: 2, kind: input, shape index: {}]   ;;  %s794_s3 = inlined_call_operand.hbm [shape: bf16[128,128], index: 3, kind: input, shape index: {}]   ;;  %s795_s4 = inlined_call_operand.hbm [shape: f32[16,128], index: 4, kind: output, shape index: {}]  }
   0x1   :  { %10 = vsyncpa [#allocation6], 0 }
   0x2   :  { %11 = vsyncpa [#allocation9], 0 }
   0x3   :  { %12 = vsyncpa [#allocation4], 0  ;;  %s30_s17 = sshll.u32 %s792_s1, 4  ;;  %s742_s18 = smov [#allocation5]   ;;  %s31_s17 = int_to_ptr.hbm [resolvable:$true] %s30_s17 }
   0x4   :  { %s32_s19 = sshll.u32 %s742_s18, 4  ;;  %s17_s22 = sshll.u32 %s791_s0, 4  ;;  %s33_s19 = int_to_ptr.vmem [resolvable:$true] %s32_s19  ;;  %s18_s22 = int_to_ptr.hbm [resolvable:$true] %s17_s22 }
   0x5   :  { %s743_s23 = smov 64   ;;  %s744_s24 = smov 4  }
   0x6   :  { %38 = dma.hbm_to_vmem [thread:$0]  %s31_s17, 1024, %s33_s19, [#allocation6], %s743_s23, %s743_s23, %s744_s24  }
   0x7   :  { %s745_s25 = smov [#allocation2]   ;;  %s43_s29 = sshll.u32 %s793_s2, 4  ;;  %s44_s29 = int_to_ptr.hbm [resolvable:$true] %s43_s29 }
   0x8   :  { %s19_s26 = sshll.u32 %s745_s25, 4  ;;  %s56_s5 = sshll.u32 %s794_s3, 4  ;;  %s20_s26 = int_to_ptr.vmem [resolvable:$true] %s19_s26  ;;  %s57_s5 = int_to_ptr.hbm [resolvable:$true] %s56_s5 }
   0x9   :  { %25 = dma.hbm_to_vmem [thread:$0]  %s18_s22, 128, %s20_s26, [#allocation3], %s743_s23, %s743_s23, %s744_s24  }
   0xa   :  { %s746_s6 = smov [#allocation7]   ;;  %s747_s0 = smov [#allocation8]  }
   0xb   :  { %s45_s7 = sshll.u32 %s746_s6, 4  ;;  %s58_s8 = sshll.u32 %s747_s0, 4  ;;  %s46_s7 = int_to_ptr.vmem [resolvable:$true] %s45_s7  ;;  %s59_s8 = int_to_ptr.vmem [resolvable:$true] %s58_s8 }
   0xc   :  { %51 = dma.hbm_to_vmem [thread:$0]  %s44_s29, 2048, %s46_s7, [#allocation6], %s743_s23, %s743_s23, %s744_s24  }
   0xd   :  { %64 = dma.hbm_to_vmem [thread:$0]  %s57_s5, 1024, %s59_s8, [#allocation9], %s743_s23, %s743_s23, %s744_s24  }
   0xe   :  { %734 = dma.done.wait [#allocation3], 128  }
   0xf   :  { %735 = vsyncadd [#allocation3], 4294967168 }
  0x10   :  { %736 = dma.done.wait [#allocation6], 3072  }
  0x11   :  { %737 = vsyncadd [#allocation6], 4294964224 }
  0x12   :  { %738 = dma.done.wait [#allocation9], 1024  }
  0x13   :  { %739 = vsyncadd [#allocation9], 4294966272  ;;  %v580_v0 = vld [vmem:[#allocation5 + $0x38] sm:$0xff]  ;;  %v579_v1 = vld [vmem:[#allocation5 + $0x30] sm:$0xff]  ;;  %s748_s2 = smov [#allocation10]   ;;  %s425_s11 = sshll.u32 %s795_s4, 4  ;;  %s426_s11 = int_to_ptr.hbm [resolvable:$true] %s425_s11 }
  0x14   :  { %155 = vmatpush.bf16.msra.mxu0 %v580_v0  ;;  %v588_v2 = vld [vmem:[#allocation7 + $0x38] sm:$0xff]  ;;  %v587_v3 = vld [vmem:[#allocation7 + $0x30] sm:$0xff]  ;;  %v578_v4 = vld [vmem:[#allocation5 + $0x28] sm:$0xff]  ;;  %s423_s3 = sshll.u32 %s748_s2, 4  ;;  %s749_s12 = smov 128   ;;  %s424_s3 = int_to_ptr.vmem [resolvable:$true] %s423_s3 }
  0x15   :  { %236 = vmatpush.bf16.msra.mxu1 %v588_v2  ;;  %v586_v5 = vld [vmem:[#allocation7 + $0x28] sm:$0xff]  ;;  %v577_v6 = vld [vmem:[#allocation5 + $0x20] sm:$0xff]  ;;  %v576_v8 = vld [vmem:[#allocation5 + $0x18] sm:$0xff]  ;;  %s750_s13 = smov 8  }
  0x16   :  { %v585_v7 = vld [vmem:[#allocation7 + $0x20] sm:$0xff]  ;;  %v575_v9 = vld [vmem:[#allocation5 + $0x10] sm:$0xff]  ;;  %v574_v10 = vld [vmem:[#allocation5 + $0x8] sm:$0xff] }
  0x17   :  { %v573_v11 = vld [vmem:[#allocation5] sm:$0xff]  ;;  %v572_v12 = vld [vmem:[#allocation2] sm:$0xff]  ;;  %v583_v14 = vld [vmem:[#allocation7 + $0x10] sm:$0xff] }
  0x18   :  { %156 = vmatpush.bf16.msra.mxu0 %v579_v1  ;;  %v584_v13 = vld [vmem:[#allocation7 + $0x18] sm:$0xff]  ;;  %v582_v15 = vld [vmem:[#allocation7 + $0x8] sm:$0xff]  ;;  %v581_v16 = vld [vmem:[#allocation7] sm:$0xff] }
  0x19   :  { %237 = vmatpush.bf16.msra.mxu1 %v587_v3  ;;  %v596_v17 = vld [vmem:[#allocation7 + $0x78] sm:$0xff]  ;;  %v595_v18 = vld [vmem:[#allocation7 + $0x70] sm:$0xff]  ;;  %v594_v19 = vld [vmem:[#allocation7 + $0x68] sm:$0xff] }
  0x1a   :  { %320 = vmatpush.bf16.msra.mxu2 %v596_v17  ;;  %v593_v20 = vld [vmem:[#allocation7 + $0x60] sm:$0xff]  ;;  %v81_v21 = vld [vmem:[#allocation2] sm:$0xff]   ;;  %v591_v32 = vld [vmem:[#allocation7 + $0x50] sm:$0xff] }
  0x1b   :  { %v99_v23 = vunpack.c.l.bf16 %v81_v21  ;;  %v100_v24 = vunpack.c.h.bf16 %v81_v21  ;;  %v592_v31 = vld [vmem:[#allocation7 + $0x58] sm:$0xff]  ;;  %v590_v33 = vld [vmem:[#allocation7 + $0x48] sm:$0xff]  ;;  %v589_v34 = vld [vmem:[#allocation7 + $0x40] sm:$0xff] }
  0x1c   :  { %157 = vmatpush.bf16.msra.mxu0 %v578_v4  ;;  %v604_v35 = vld [vmem:[#allocation8 + $0x38] sm:$0xff]  ;;  %v603_v36 = vld [vmem:[#allocation8 + $0x30] sm:$0xff]  ;;  %v602_v37 = vld [vmem:[#allocation8 + $0x28] sm:$0xff] }
  0x1d   :  { %238 = vmatpush.bf16.msra.mxu1 %v586_v5  ;;  %403 = vmatpush.bf16.msra.mxu3 %v604_v35  ;;  %v601_v38 = vld [vmem:[#allocation8 + $0x20] sm:$0xff]  ;;  %v600_v46 = vld [vmem:[#allocation8 + $0x18] sm:$0xff]  ;;  %v599_v47 = vld [vmem:[#allocation8 + $0x10] sm:$0xff] }
  0x1e   :  { %321 = vmatpush.bf16.msra.mxu2 %v595_v18  ;;  %v598_v48 = vld [vmem:[#allocation8 + $0x8] sm:$0xff]  ;;  %v597_v49 = vld [vmem:[#allocation8] sm:$0xff] }
  0x20   :  { %158 = vmatpush.bf16.msra.mxu0 %v577_v6 }
  0x21   :  { %239 = vmatpush.bf16.msra.mxu1 %v585_v7  ;;  %404 = vmatpush.bf16.msra.mxu3 %v603_v36 }
  0x22   :  { %322 = vmatpush.bf16.msra.mxu2 %v594_v19 }
  0x24   :  { %159 = vmatpush.bf16.msra.mxu0 %v576_v8 }
  0x25   :  { %240 = vmatpush.bf16.msra.mxu1 %v584_v13  ;;  %405 = vmatpush.bf16.msra.mxu3 %v602_v37 }
  0x26   :  { %323 = vmatpush.bf16.msra.mxu2 %v593_v20 }
  0x28   :  { %160 = vmatpush.bf16.msra.mxu0 %v575_v9 }
  0x29   :  { %241 = vmatpush.bf16.msra.mxu1 %v583_v14  ;;  %406 = vmatpush.bf16.msra.mxu3 %v601_v38 }
  0x2a   :  { %324 = vmatpush.bf16.msra.mxu2 %v592_v31 }
  0x2c   :  { %161 = vmatpush.bf16.msra.mxu0 %v574_v10 }
  0x2d   :  { %242 = vmatpush.bf16.msra.mxu1 %v582_v15  ;;  %407 = vmatpush.bf16.msra.mxu3 %v600_v46 }
  0x2e   :  { %325 = vmatpush.bf16.msra.mxu2 %v591_v32 }
  0x30   :  { %162 = vmatpush.bf16.msra.mxu0 %v573_v11 }
  0x31   :  { %243 = vmatpush.bf16.msra.mxu1 %v581_v16  ;;  %408 = vmatpush.bf16.msra.mxu3 %v599_v47 }
  0x32   :  { %326 = vmatpush.bf16.msra.mxu2 %v590_v33 }
  0x33   :  { %163 = vmatmul.bf16.vlgmr.msra.gmra.mxu0 %v572_v12 }
  0x35   :  { %409 = vmatpush.bf16.msra.mxu3 %v598_v48 }
  0x36   :  { %327 = vmatpush.bf16.msra.mxu2 %v589_v34 }
  0x39   :  { %410 = vmatpush.bf16.msra.mxu3 %v597_v49 }
  0xb0   :  { %v164_v22 = vpop.f32.mrf.mxu0 }
  0xb1   :  { %v165_v25 = vadd.f32 %v164_v22, %v99_v23 }
  0xb3   :  { %v169_v28 = vmax.f32 %v165_v25, 0.0 }
  0xb8   :  { %v166_v26 = vpop.f32.mrf.mxu0 }
  0xb9   :  { %v167_v27 = vadd.f32 %v166_v26, %v100_v24 }
  0xbb   :  { %v170_v29 = vmax.f32 %v167_v27, 0.0 }
  0xbd   :  { %v171_v30 = vpack.c.bf16 %v170_v29, %v169_v28 }
  0xbf   :  { %244 = vmatmul.bf16.vlgmr.msra.gmra.mxu1 %v171_v30 }
 0x13c   :  { %v245_v39 = vpop.f32.mrf.mxu1 }
 0x13d   :  { %v250_v40 = vadd.f32 %v245_v39, %v165_v25 }
 0x13f   :  { %v252_v43 = vmax.f32 %v250_v40, 0.0 }
 0x144   :  { %v247_v41 = vpop.f32.mrf.mxu1 }
 0x145   :  { %v251_v42 = vadd.f32 %v247_v41, %v167_v27 }
 0x147   :  { %v253_v44 = vmax.f32 %v251_v42, 0.0 }
 0x149   :  { %v254_v45 = vpack.c.bf16 %v253_v44, %v252_v43 }
 0x14b   :  { %328 = vmatmul.bf16.vlgmr.msra.gmra.mxu2 %v254_v45 }
 0x1ce   :  { %v329_v50 = vpop.f32.mrf.mxu2 }
 0x1cf   :  { %v334_v51 = vadd.f32 %v329_v50, %v250_v40 }
 0x1d1   :  { %v336_v54 = vmax.f32 %v334_v51, 0.0 }
 0x1d6   :  { %v331_v52 = vpop.f32.mrf.mxu2 }
 0x1d7   :  { %v335_v53 = vadd.f32 %v331_v52, %v251_v42 }
 0x1d9   :  { %v337_v55 = vmax.f32 %v335_v53, 0.0 }
 0x1db   :  { %v338_v56 = vpack.c.bf16 %v337_v55, %v336_v54 }
 0x1dd   :  { %411 = vmatmul.bf16.vlgmr.msra.gmra.mxu3 %v338_v56 }
 0x260   :  { %v412_v57 = vpop.f32.mrf.mxu3 }
 0x261   :  { %417 = vst [vmem:[#allocation10] sm:$0xff] %v412_v57 }
 0x268   :  { %v414_v58 = vpop.f32.mrf.mxu3 }
 0x269   :  { %418 = vst [vmem:[#allocation10 + $0x8] sm:$0xff] %v414_v58 }
 0x26a   :  { %431 = dma.vmem_to_hbm [thread:$0]  %s424_s3, 256, %s426_s11, [#allocation4], %s749_s12, %s749_s12, %s750_s13  }
 0x26b   :  { %740 = dma.done.wait [#allocation4], 256  }
 0x26c   :  { %741 = vsyncadd [#allocation4], 4294967040 }
 0x26d   :  { %436 = vsyncpa [#allocation3], 1 }
 0x26e   :  { %437 = vsyncpa [#allocation6], 1 }
 0x26f   :  { %438 = vsyncpa [#allocation9], 1 }
 0x270   :  { %439 = vsyncpa [#allocation4], 1 }

</bundles_post_ra>
